<compile_context>
chip_gen: v5e
topology: v5e:2x2
jax: 0.10.0
libtpu: 0.0.40
codegen_flags: <defaults>
</compile_context>

<pallas_src>
import jax
import jax.numpy as jnp
from jax.experimental import pallas as pl
from jax.experimental.pallas import tpu as pltpu

LANE = 128  # pad channel dims to a full vreg lane width


def _round_up(v, m):
    return ((v + m - 1) // m) * m


def _pad2(a, rows, cols):
    out = jnp.zeros((rows, cols), a.dtype)
    return out.at[: a.shape[0], : a.shape[1]].set(a)


# ---------------------------------------------------------------------------
# Fused Pallas kernel: all SAGE layers in one call
# ---------------------------------------------------------------------------

def _fused_sage_encoder_kernel(a_ref, x_ref, w_ref, b_ref, invdeg_ref, o_ref,
                               h_ref, cat_ref):
    """a_ref     : [Np, Np]           bf16 integer adjacency counts (exact; A[dst, src])
       x_ref     : [Np, LANE]         bf16 zero-padded node features
       w_ref     : [L, 2*LANE, LANE]  bf16 BN-folded stacked weights [Wl; Wr] ([Cin, Cout])
       b_ref     : [L, 1, LANE]       f32  BN-folded, zero-padded biases
       invdeg_ref: [Np, 1]            f32  1/deg(dst) (post-matmul mean normalization)
       o_ref     : [Np, LANE]         f32  last-layer output (no BN, no ReLU)
       h_ref     : [Np, LANE]         bf16 VMEM scratch — resident activation
       cat_ref   : [Np, 2*LANE]       bf16 VMEM scratch — [agg | h] MXU operand"""
    num_layers = w_ref.shape[0]

    def layer_out(l):
        h = h_ref[...]
        # integer-count aggregation on the MXU, then exact f32 mean normalization (VPU)
        cnt = jnp.dot(a_ref[...], h, preferred_element_type=jnp.float32)
        agg = cnt * invdeg_ref[...]
        # single K=256 MXU pass: [agg | h] @ [Wl; Wr]  (BN already folded into W / b)
        cat_ref[:, :LANE] = agg.astype(jnp.bfloat16)
        cat_ref[:, LANE:] = h
        return jnp.dot(cat_ref[...], w_ref[l],
                       preferred_element_type=jnp.float32) + b_ref[l]

    h_ref[...] = x_ref[...]

    # first L-1 layers: conv -> (folded) BN -> ReLU   (dropout = identity in eval mode)
    @pl.loop(0, num_layers - 1)
    def _(l):
        h_ref[...] = jnp.maximum(layer_out(l), 0.0).astype(jnp.bfloat16)

    # last layer: conv only
    o_ref[...] = layer_out(num_layers - 1)


# ---------------------------------------------------------------------------
# Host-side glue: parameters, BN folding, padding, dense aggregation operator
# ---------------------------------------------------------------------------

def init_params(key, in_channels, hidden_channels, out_channels, num_layers=5):
    """Deterministic parameters matching the module's parameter shapes.
    Weights are stored pre-transposed as [Cin, Cout] so the kernel does x @ W."""
    cins = [in_channels] + [hidden_channels] * (num_layers - 1)
    couts = [hidden_channels] * (num_layers - 1) + [out_channels]
    convs = []
    for cin, cout in zip(cins, couts):
        k1, k2, k3, key = jax.random.split(key, 4)
        scale = 1.0 / jnp.sqrt(jnp.float32(cin))
        Wl = jax.random.uniform(k1, (cin, cout), jnp.float32, -1.0, 1.0) * scale
        Wr = jax.random.uniform(k2, (cin, cout), jnp.float32, -1.0, 1.0) * scale
        b = jax.random.uniform(k3, (1, cout), jnp.float32, -1.0, 1.0) * scale
        convs.append((Wl, Wr, b))
    bns = []
    for _ in range(num_layers - 1):
        c = hidden_channels
        bns.append((jnp.ones((1, c), jnp.float32),    # gamma
                    jnp.zeros((1, c), jnp.float32),   # beta
                    jnp.zeros((1, c), jnp.float32),   # running_mean
                    jnp.ones((1, c), jnp.float32)))   # running_var
    return convs, bns


def _fold_bn(Wl, Wr, b, gamma, beta, mean, var, eps=1e-5):
    """Fold eval-mode BatchNorm1d into the SAGEConv linear weights/bias."""
    s = gamma * jax.lax.rsqrt(var + eps)          # [1, C]
    return Wl * s, Wr * s, (b - mean) * s + beta


def prepare_inputs(x, edge_index, convs, bns):
    """Build integer-count A + f32 invdeg, fold BN, stack [Wl; Wr], zero-pad lane-dense."""
    N = x.shape[0]
    num_layers = len(convs)
    Np = _round_up(max(N, 8), 8)

    src, dst = edge_index[0], edge_index[1]
    # A[dst, src] = #edges src->dst  (duplicates counted in numerator AND denominator, matching
    # PyG scatter-mean on multigraphs); isolated dst nodes aggregate to 0 via the deg clamp.
    adj = jnp.zeros((N, N), jnp.float32).at[dst, src].add(1.0)
    deg = adj.sum(axis=1, keepdims=True)
    inv_deg = 1.0 / jnp.maximum(deg, 1.0)

    # Small integer counts are exact in bf16 (up to 256); 1/deg stays in f32 post-matmul.
    A_p = _pad2(adj, Np, Np).astype(jnp.bfloat16)
    invdeg_p = _pad2(inv_deg, Np, 1).astype(jnp.float32)
    x_p = _pad2(x, Np, LANE).astype(jnp.bfloat16)

    w_l, b_l = [], []
    for i, (Wl, Wr, b) in enumerate(convs):
        if i < num_layers - 1:
            gamma, beta, rmean, rvar = bns[i]
            Wl, Wr, b = _fold_bn(Wl, Wr, b, gamma, beta, rmean, rvar)
        W = jnp.concatenate([_pad2(Wl, LANE, LANE), _pad2(Wr, LANE, LANE)], axis=0)
        w_l.append(W)                                  # [2*LANE, LANE]
        b_l.append(_pad2(b, 1, LANE))
    w = jnp.stack(w_l).astype(jnp.bfloat16)            # [L, 2*LANE, LANE]
    bb = jnp.stack(b_l).astype(jnp.float32)            # [L, 1, LANE]
    return A_p, x_p, w, bb, invdeg_p, Np


def sage_encoder_forward(x, edge_index, convs, bns):
    N = x.shape[0]
    out_channels = convs[-1][0].shape[1]
    A_p, x_p, w, bb, invdeg_p, Np = prepare_inputs(x, edge_index, convs, bns)
    L = int(w.shape[0])

    in_bytes = (A_p.size * 2 + x_p.size * 2 + w.size * 2 + bb.size * 4 + invdeg_p.size * 4)
    out_bytes = Np * LANE * 4
    scratch_bytes = Np * LANE * 2 + Np * 2 * LANE * 2
    io_bytes = in_bytes + out_bytes

    # Generation-aware VMEM limit: ~7/8 of physical VMEM (≈112 MiB on v5e/v6e, ≈56 MiB on v7x),
    # leaving headroom for compiler-internal scratch.
    try:
        vmem_cap = int(pltpu.get_tpu_info().vmem_capacity_bytes)
    except Exception:
        vmem_cap = 128 * 2 ** 20
    usable = (vmem_cap * 7) // 8
    vmem_limit = int(min(usable, max(32 * 2 ** 20, 4 * (io_bytes + scratch_bytes))))

    flops = L * (2 * Np * Np * LANE + 2 * Np * (2 * LANE) * LANE)
    cost = pl.CostEstimate(flops=flops, transcendentals=0, bytes_accessed=io_bytes)

    out_p = pl.pallas_call(
        _fused_sage_encoder_kernel,
        out_shape=jax.ShapeDtypeStruct((Np, LANE), jnp.float32),
        in_specs=[pl.BlockSpec(memory_space=pltpu.MemorySpace.VMEM)] * 5,
        out_specs=pl.BlockSpec(memory_space=pltpu.MemorySpace.VMEM),
        scratch_shapes=[pltpu.VMEM((Np, LANE), jnp.bfloat16),        # h (resident activation)
                        pltpu.VMEM((Np, 2 * LANE), jnp.bfloat16)],   # [agg | h] MXU operand
        compiler_params=pltpu.CompilerParams(vmem_limit_bytes=vmem_limit),
        cost_estimate=cost,
    )(A_p, x_p, w, bb, invdeg_p)
    return out_p[:N, :out_channels]


# ---------------------------------------------------------------------------
# References
# ---------------------------------------------------------------------------

def reference_forward_kernel_numerics(x, edge_index, convs, bns):
    """Pure-JAX reference reproducing the kernel numerics (bf16 operands, f32 accum)."""
    N = x.shape[0]
    out_channels = convs[-1][0].shape[1]
    A_p, x_p, w, bb, invdeg_p, _ = prepare_inputs(x, edge_index, convs, bns)
    h = x_p
    L = w.shape[0]
    out = None
    for l in range(L):
        cnt = jnp.dot(A_p, h, preferred_element_type=jnp.float32)
        agg = (cnt * invdeg_p).astype(jnp.bfloat16)
        cat = jnp.concatenate([agg, h], axis=-1)
        out = jnp.dot(cat, w[l], preferred_element_type=jnp.float32) + bb[l]
        if l < L - 1:
            h = jnp.maximum(out, 0.0).astype(jnp.bfloat16)
    return out[:N, :out_channels]


def reference_forward_f32(x, edge_index, convs, bns, eps=1e-5):
    """True f32 SAGEConv + eval-mode BatchNorm1d + ReLU reference (no padding, no bf16)."""
    N = x.shape[0]
    src, dst = edge_index[0], edge_index[1]
    adj = jnp.zeros((N, N), jnp.float32).at[dst, src].add(1.0)
    deg = adj.sum(axis=1, keepdims=True)
    A = adj / jnp.maximum(deg, 1.0)
    h = x
    L = len(convs)
    for i, (Wl, Wr, b) in enumerate(convs):
        out = (A @ h) @ Wl + h @ Wr + b
        if i < L - 1:
            gamma, beta, mean, var = bns[i]
            out = (out - mean) * gamma * jax.lax.rsqrt(var + eps) + beta
            h = jnp.maximum(out, 0.0)          # dropout = identity in eval mode
        else:
            h = out
    return h


# ---------------------------------------------------------------------------
# Main
# ---------------------------------------------------------------------------

if __name__ == "__main__":
    key = jax.random.PRNGKey(0)

    N = 16               # number of graph nodes
    E = 48               # number of edges
    in_channels = 8
    hidden_channels = 32
    out_channels = 16
    num_layers = 5

    kx, ke, kp = jax.random.split(key, 3)
    x = jax.random.normal(kx, (N, in_channels), jnp.float32)
    edge_index = jax.random.randint(ke, (2, E), 0, N, dtype=jnp.int32)

    convs, bns = init_params(kp, in_channels, hidden_channels, out_channels, num_layers)

    out = sage_encoder_forward(x, edge_index, convs, bns)
    out = jax.block_until_ready(out)

    assert out.shape == (N, out_channels), out.shape
    assert bool(jnp.all(jnp.isfinite(out))), "non-finite output"

    # 1) exact-numerics check (same bf16 operand / f32 accumulation path)
    ref_bf16 = jax.block_until_ready(reference_forward_kernel_numerics(x, edge_index, convs, bns))
    err_bf16 = float(jnp.max(jnp.abs(out - ref_bf16)))
    assert err_bf16 < 5e-2, f"kernel vs bf16-numerics reference: max abs err = {err_bf16}"

    # 2) true f32 model check (SAGEConv + BN + ReLU, no padding / casting)
    ref_f32 = jax.block_until_ready(reference_forward_f32(x, edge_index, convs, bns))
    err_f32 = float(jnp.max(jnp.abs(out - ref_f32)))
    assert err_f32 < 1e-1, f"kernel vs f32 reference: max abs err = {err_f32}"

    print("KERNEL_OK")
</pallas_src>

<mosaic_0001>
module attributes {stable_mosaic.version = 11 : i64} {
  func.func @_fused_sage_encoder_kernel(%arg0: memref<16x16xbf16, #tpu.memory_space<vmem>>, %arg1: memref<16x128xbf16, #tpu.memory_space<vmem>>, %arg2: memref<5x256x128xbf16, #tpu.memory_space<vmem>>, %arg3: memref<5x1x128xf32, #tpu.memory_space<vmem>>, %arg4: memref<16x1xf32, #tpu.memory_space<vmem>>, %arg5: memref<16x128xf32, #tpu.memory_space<vmem>>, %arg6: memref<16x128xbf16, #tpu.memory_space<vmem>>, %arg7: memref<16x256xbf16, #tpu.memory_space<vmem>>) attributes {dimension_semantics = [], scalar_prefetch = 0 : i64, scratch_operands = 2 : i64, tpu.core_type = #tpu.core_type<tc>} {
    %c0 = arith.constant 0 : index
    %c0_0 = arith.constant 0 : index
    %0 = vector.load %arg1[%c0, %c0_0] : memref<16x128xbf16, #tpu.memory_space<vmem>>, vector<16x128xbf16>
    %c0_1 = arith.constant 0 : index
    %c0_2 = arith.constant 0 : index
    %1 = vector.load %arg6[%c0_1, %c0_2] : memref<16x128xbf16, #tpu.memory_space<vmem>>, vector<16x128xbf16>
    tpu.vector_store %arg6[%c0_1, %c0_2], %0 {strides = array<i32>} : memref<16x128xbf16, #tpu.memory_space<vmem>>, vector<16x128xbf16>,
    %c0_i32 = arith.constant 0 : i32
    %c4_i32 = arith.constant 4 : i32
    %2 = arith.addi %c0_i32, %c4_i32 : i32
    %c1_i32 = arith.constant 1 : i32
    scf.for %arg8 = %c0_i32 to %2 step %c1_i32  : i32 {
      %c1_i32_23 = arith.constant 1 : i32
      %21 = arith.muli %arg8, %c1_i32_23 : i32
      %c0_i32_24 = arith.constant 0 : i32
      %22 = arith.addi %c0_i32_24, %21 : i32
      %c0_25 = arith.constant 0 : index
      %c0_26 = arith.constant 0 : index
      %23 = vector.load %arg6[%c0_25, %c0_26] : memref<16x128xbf16, #tpu.memory_space<vmem>>, vector<16x128xbf16>
      %c0_27 = arith.constant 0 : index
      %c0_28 = arith.constant 0 : index
      %24 = vector.load %arg0[%c0_27, %c0_28] : memref<16x16xbf16, #tpu.memory_space<vmem>>, vector<16x16xbf16>
      %cst_29 = arith.constant dense<0.000000e+00> : vector<16x128xf32>
      %25 = tpu.matmul %24, %23, %cst_29 {dimension_numbers = #tpu.dot_dimension_numbers<[1], [0], [0], [1], [0, 0, 1, 1], [], []>} : vector<16x16xbf16>, vector<16x128xbf16>, vector<16x128xf32> -> vector<16x128xf32>
      %c0_30 = arith.constant 0 : index
      %c0_31 = arith.constant 0 : index
      %26 = vector.load %arg4[%c0_30, %c0_31] : memref<16x1xf32, #tpu.memory_space<vmem>>, vector<16x1xf32>
      %27 = vector.broadcast %26 : vector<16x1xf32> to vector<16x128xf32>
      %28 = arith.mulf %25, %27 : vector<16x128xf32>
      %29 = arith.truncf %28 : vector<16x128xf32> to vector<16x128xbf16>
      %c0_32 = arith.constant 0 : index
      %c0_33 = arith.constant 0 : index
      %30 = vector.load %arg7[%c0_32, %c0_33] : memref<16x256xbf16, #tpu.memory_space<vmem>>, vector<16x128xbf16>
      tpu.vector_store %arg7[%c0_32, %c0_33], %29 {strides = array<i32>} : memref<16x256xbf16, #tpu.memory_space<vmem>>, vector<16x128xbf16>,
      %c0_34 = arith.constant 0 : index
      %c128_35 = arith.constant 128 : index
      %31 = vector.load %arg7[%c0_34, %c128_35] : memref<16x256xbf16, #tpu.memory_space<vmem>>, vector<16x128xbf16>
      tpu.vector_store %arg7[%c0_34, %c128_35], %23 {strides = array<i32>} : memref<16x256xbf16, #tpu.memory_space<vmem>>, vector<16x128xbf16>,
      %c0_36 = arith.constant 0 : index
      %c0_37 = arith.constant 0 : index
      %32 = vector.load %arg7[%c0_36, %c0_37] : memref<16x256xbf16, #tpu.memory_space<vmem>>, vector<16x256xbf16>
      %33 = arith.index_cast %22 : i32 to index
      %c0_38 = arith.constant 0 : index
      %c0_39 = arith.constant 0 : index
      %34 = vector.load %arg2[%33, %c0_38, %c0_39] : memref<5x256x128xbf16, #tpu.memory_space<vmem>>, vector<1x256x128xbf16>
      %35 = vector.shape_cast %34 : vector<1x256x128xbf16> to vector<256x128xbf16>
      %cst_40 = arith.constant dense<0.000000e+00> : vector<16x128xf32>
      %36 = tpu.matmul %32, %35, %cst_40 {dimension_numbers = #tpu.dot_dimension_numbers<[1], [0], [0], [1], [0, 0, 1, 1], [], []>} : vector<16x256xbf16>, vector<256x128xbf16>, vector<16x128xf32> -> vector<16x128xf32>
      %37 = arith.index_cast %22 : i32 to index
      %c0_41 = arith.constant 0 : index
      %c0_42 = arith.constant 0 : index
      %38 = vector.load %arg3[%37, %c0_41, %c0_42] : memref<5x1x128xf32, #tpu.memory_space<vmem>>, vector<1x1x128xf32>
      %39 = vector.shape_cast %38 : vector<1x1x128xf32> to vector<1x128xf32>
      %40 = vector.broadcast %39 : vector<1x128xf32> to vector<16x128xf32>
      %41 = arith.addf %36, %40 : vector<16x128xf32>
      %cst_43 = arith.constant 0.000000e+00 : f32
      %42 = vector.broadcast %cst_43 : f32 to vector<16x128xf32>
      %43 = arith.maximumf %41, %42 : vector<16x128xf32>
      %44 = arith.truncf %43 : vector<16x128xf32> to vector<16x128xbf16>
      %c0_44 = arith.constant 0 : index
      %c0_45 = arith.constant 0 : index
      %45 = vector.load %arg6[%c0_44, %c0_45] : memref<16x128xbf16, #tpu.memory_space<vmem>>, vector<16x128xbf16>
      tpu.vector_store %arg6[%c0_44, %c0_45], %44 {strides = array<i32>} : memref<16x128xbf16, #tpu.memory_space<vmem>>, vector<16x128xbf16>,
    }
    %c4_i32_3 = arith.constant 4 : i32
    %c0_4 = arith.constant 0 : index
    %c0_5 = arith.constant 0 : index
    %3 = vector.load %arg6[%c0_4, %c0_5] : memref<16x128xbf16, #tpu.memory_space<vmem>>, vector<16x128xbf16>
    %c0_6 = arith.constant 0 : index
    %c0_7 = arith.constant 0 : index
    %4 = vector.load %arg0[%c0_6, %c0_7] : memref<16x16xbf16, #tpu.memory_space<vmem>>, vector<16x16xbf16>
    %cst = arith.constant dense<0.000000e+00> : vector<16x128xf32>
    %5 = tpu.matmul %4, %3, %cst {dimension_numbers = #tpu.dot_dimension_numbers<[1], [0], [0], [1], [0, 0, 1, 1], [], []>} : vector<16x16xbf16>, vector<16x128xbf16>, vector<16x128xf32> -> vector<16x128xf32>
    %c0_8 = arith.constant 0 : index
    %c0_9 = arith.constant 0 : index
    %6 = vector.load %arg4[%c0_8, %c0_9] : memref<16x1xf32, #tpu.memory_space<vmem>>, vector<16x1xf32>
    %7 = vector.broadcast %6 : vector<16x1xf32> to vector<16x128xf32>
    %8 = arith.mulf %5, %7 : vector<16x128xf32>
    %9 = arith.truncf %8 : vector<16x128xf32> to vector<16x128xbf16>
    %c0_10 = arith.constant 0 : index
    %c0_11 = arith.constant 0 : index
    %10 = vector.load %arg7[%c0_10, %c0_11] : memref<16x256xbf16, #tpu.memory_space<vmem>>, vector<16x128xbf16>
    tpu.vector_store %arg7[%c0_10, %c0_11], %9 {strides = array<i32>} : memref<16x256xbf16, #tpu.memory_space<vmem>>, vector<16x128xbf16>,
    %c0_12 = arith.constant 0 : index
    %c128 = arith.constant 128 : index
    %11 = vector.load %arg7[%c0_12, %c128] : memref<16x256xbf16, #tpu.memory_space<vmem>>, vector<16x128xbf16>
    tpu.vector_store %arg7[%c0_12, %c128], %3 {strides = array<i32>} : memref<16x256xbf16, #tpu.memory_space<vmem>>, vector<16x128xbf16>,
    %c0_13 = arith.constant 0 : index
    %c0_14 = arith.constant 0 : index
    %12 = vector.load %arg7[%c0_13, %c0_14] : memref<16x256xbf16, #tpu.memory_space<vmem>>, vector<16x256xbf16>
    %c4 = arith.constant 4 : index
    %c0_15 = arith.constant 0 : index
    %c0_16 = arith.constant 0 : index
    %13 = vector.load %arg2[%c4, %c0_15, %c0_16] : memref<5x256x128xbf16, #tpu.memory_space<vmem>>, vector<1x256x128xbf16>
    %14 = vector.shape_cast %13 : vector<1x256x128xbf16> to vector<256x128xbf16>
    %cst_17 = arith.constant dense<0.000000e+00> : vector<16x128xf32>
    %15 = tpu.matmul %12, %14, %cst_17 {dimension_numbers = #tpu.dot_dimension_numbers<[1], [0], [0], [1], [0, 0, 1, 1], [], []>} : vector<16x256xbf16>, vector<256x128xbf16>, vector<16x128xf32> -> vector<16x128xf32>
    %c4_18 = arith.constant 4 : index
    %c0_19 = arith.constant 0 : index
    %c0_20 = arith.constant 0 : index
    %16 = vector.load %arg3[%c4_18, %c0_19, %c0_20] : memref<5x1x128xf32, #tpu.memory_space<vmem>>, vector<1x1x128xf32>
    %17 = vector.shape_cast %16 : vector<1x1x128xf32> to vector<1x128xf32>
    %18 = vector.broadcast %17 : vector<1x128xf32> to vector<16x128xf32>
    %19 = arith.addf %15, %18 : vector<16x128xf32>
    %c0_21 = arith.constant 0 : index
    %c0_22 = arith.constant 0 : index
    %20 = vector.load %arg5[%c0_21, %c0_22] : memref<16x128xf32, #tpu.memory_space<vmem>>, vector<16x128xf32>
    tpu.vector_store %arg5[%c0_21, %c0_22], %19 {strides = array<i32>} : memref<16x128xf32, #tpu.memory_space<vmem>>, vector<16x128xf32>,
    return
  }
}

</mosaic_0001>

<bundles_post_ra>
// kernel: tpu_custom_call.1
= control target key start
LH: loop header
LB: loop body
LE: loop exit
PB: predicated region body
PF: predicated region fallthrough
CT: control target
= control target key end

     0   :  { %10 = vsyncpa [#allocation5], 0  ;;  %s976_s0 = inlined_call_operand.vmem [shape: bf16[16,16], index: 0, kind: input, shape index: {}]   ;;  %s977_s1 = inlined_call_operand.vmem [shape: bf16[16,128], index: 1, kind: input, shape index: {}]   ;;  %s978_s2 = inlined_call_operand.hbm [shape: bf16[5,256,128], index: 2, kind: input, shape index: {}]   ;;  %s979_s3 = inlined_call_operand.hbm [shape: f32[5,1,128], index: 3, kind: input, shape index: {}]   ;;  %s980_s4 = inlined_call_operand.vmem [shape: f32[16,1], index: 4, kind: input, shape index: {}]   ;;  %s981_s5 = inlined_call_operand.hbm [shape: f32[16,128], index: 5, kind: output, shape index: {}]  }
   0x1   :  { %11 = vsyncpa [#allocation8], 0 }
   0x2   :  { %12 = vsyncpa [#allocation6], 0  ;;  %s21_s20 = sshll.u32 %s978_s2, 4  ;;  %s875_s21 = smov [#allocation4]   ;;  %s22_s20 = int_to_ptr.hbm [resolvable:$true] %s21_s20 }
   0x3   :  { %s23_s22 = sshll.u32 %s875_s21, 4  ;;  %s34_s25 = sshll.u32 %s979_s3, 4  ;;  %s24_s22 = int_to_ptr.vmem [resolvable:$true] %s23_s22  ;;  %s35_s25 = int_to_ptr.hbm [resolvable:$true] %s34_s25 }
   0x4   :  { %s876_s26 = smov 64   ;;  %s877_s27 = smov 4  }
   0x5   :  { %29 = dma.hbm_to_vmem [thread:$0]  %s22_s20, 10240, %s24_s22, [#allocation5], %s876_s26, %s876_s26, %s877_s27  }
   0x6   :  { %s878_s28 = smov [#allocation7]   ;;  %s879_s30 = smov 16  }
   0x7   :  { %s36_s29 = sshll.u32 %s878_s28, 4  ;;  %s880_s6 = smov 1   ;;  %s37_s29 = int_to_ptr.vmem [resolvable:$true] %s36_s29 }
   0x8   :  { %42 = dma.hbm_to_vmem [thread:$0]  %s35_s25, 80, %s37_s29, [#allocation8], %s879_s30, %s879_s30, %s880_s6  }
   0x9   :  { %865 = dma.done.wait [#allocation5], 10240  }
   0xa   :  { %866 = vsyncadd [#allocation5], 4294957056 }
   0xb   :  { %867 = dma.done.wait [#allocation8], 80  }
   0xc   :  { %868 = vsyncadd [#allocation8], 4294967216  ;;  %v54_v0 = vld [vmem:[%s977_s1] sm:$0xff]   ;;  %s925_s3 = smov 0  }
   0xd   :  { %56 = vst [vmem:[#allocation2] sm:$0xff] %v54_v0  }
   0xe LB: > { %v97_v2 = vld [vmem:[%s980_s4] sm:$0xff]  ;;  %v881_v4 = vmov 0   ;;  %vm79_vm0 = vcmask 130048   ;;  %s724_s1 = sshll.u32 %s873_s3, 7  ;;  %v98_v7 = vld [vmem:[%s980_s4 + $0x8] sm:$0xff]  ;;  %s154_s15 = scalar_lea.vmem [#allocation7], %s873_s3  ;;  %s873_s3 = sphi %s925_s3, %s63_s3  }
   0xf   : > { %v721_v3 = vld [vmem:[%s976_s0] sm:$0xff]  ;;  %785 = vset.pattern.permute.xlu0 %v881_v4  ;;  %s937_s12 = scalar_lea.vmem [#allocation4], %s724_s1  ;;  %s63_s3 = sadd.s32 1, %s873_s3  }
  0x10   : > { %101 = vperm.xlu0 %785, %v97_v2   ;;  %v740_v5 = vld [vmem:[%s937_s12 + $0x78] sm:$0xff]  ;;  %v739_v6 = vld [vmem:[%s937_s12 + $0x70] sm:$0xff]  ;;  %v738_v8 = vld [vmem:[%s937_s12 + $0x68] sm:$0xff]  ;;  %p60_p0 = scmp.ge.s32.totalorder %s63_s3, 4  }
  0x11   : > { %279 = vmatpush.bf16.msra.mxu2 %v740_v5  ;;  %v732_v9 = vld [vmem:[%s937_s12 + $0x38] sm:$0xff]  ;;  %v737_v10 = vld [vmem:[%s937_s12 + $0x60] sm:$0xff]  ;;  %v731_v11 = vld [vmem:[%s937_s12 + $0x30] sm:$0xff]  ;;  %v882_v53 = vmov (%p60_p0), 0   ;;  %s534_s24 = sshll.u32 (%p60_p0), %s981_s5, 4  ;;  %s884_s25 = smov (%p60_p0), 128   ;;  %s535_s24 = int_to_ptr.hbm [resolvable:$true] %s534_s24 }
  0x12   : > { %265 = vmatpush.bf16.msra.mxu1 %v732_v9  ;;  %v736_v12 = vld [vmem:[%s937_s12 + $0x58] sm:$0xff]  ;;  %v730_v13 = vld [vmem:[%s937_s12 + $0x28] sm:$0xff]  ;;  %v735_v14 = vld [vmem:[%s937_s12 + $0x50] sm:$0xff]  ;;  %s885_s26 = smov (%p60_p0), 8  }
  0x13   : > { %v729_v17 = vld [vmem:[%s937_s12 + $0x20] sm:$0xff]  ;;  %v734_v18 = vld [vmem:[%s937_s12 + $0x48] sm:$0xff]  ;;  %v728_v19 = vld [vmem:[%s937_s12 + $0x18] sm:$0xff] }
  0x14   : > { %v720_v1 = vld [vmem:[#allocation2] sm:$0xff]  ;;  %v727_v24 = vld [vmem:[%s937_s12 + $0x10] sm:$0xff]  ;;  %v726_v25 = vld [vmem:[%s937_s12 + $0x8] sm:$0xff] }
  0x15   : > { %90 = vmatpush.bf16.msra.mxu0 %v720_v1  ;;  %280 = vmatpush.bf16.msra.mxu2 %v739_v6  ;;  %v64_v15 = vld [vmem:[#allocation2] sm:$0xf]  ;;  %v65_v16 = vld [vmem:[#allocation2 + $0x4] sm:$0xf]  ;;  %v760_v54 = vld [vmem:[#allocation4 + $0x278] sm:$0xff] (%p60_p0) }
  0x16   : > { %266 = vmatpush.bf16.msra.mxu1 %v731_v11  ;;  %115 = vst [vmem:[#allocation3 + $0x4] sm:$0xf] %v64_v15  ;;  %v733_v20 = vld [vmem:[%s937_s12 + $0x40] sm:$0xff]  ;;  %v752_v55 = vld [vmem:[#allocation4 + $0x238] sm:$0xff] (%p60_p0)  ;;  %v759_v56 = vld [vmem:[#allocation4 + $0x270] sm:$0xff] (%p60_p0) }
  0x17   : > { %116 = vst [vmem:[#allocation3 + $0xc] sm:$0xf] %v65_v16  ;;  %v725_v26 = vld [vmem:[%s937_s12] sm:$0xff]  ;;  %v333_v57 = vld [vmem:[%s980_s4 + $0x8] sm:$0xff] (%p60_p0)  ;;  %v757_v59 = vld [vmem:[#allocation4 + $0x260] sm:$0xff] (%p60_p0) }
  0x18   : > { %564 = vmatmul.msk.bf16.vlgmr.msra.gmra.mxu0 %vm79_vm0, %v721_v3  ;;  %106 = vperm.xlu0 %785, %v98_v7   ;;  %v786_v40 = vld [vmem:[%s154_s15] ss:$0 sm:$0xff]  ;;  %v751_v60 = vld [vmem:[#allocation4 + $0x230] sm:$0xff] (%p60_p0)  ;;  %v756_v61 = vld [vmem:[#allocation4 + $0x258] sm:$0xff] (%p60_p0) }
  0x19   : > { %281 = vmatpush.bf16.msra.mxu2 %v738_v8  ;;  %v332_v51 = vld [vmem:[%s980_s4] sm:$0xff] (%p60_p0)  ;;  %v755_v63 = vld [vmem:[#allocation4 + $0x250] sm:$0xff] (%p60_p0)  ;;  %v749_v2 = vld [vmem:[#allocation4 + $0x220] sm:$0xff] (%p60_p0) }
  0x1a   : > { %267 = vmatpush.bf16.msra.mxu1 %v730_v13  ;;  %v742_v52 = vld [vmem:[%s976_s0] sm:$0xff] (%p60_p0)  ;;  %v748_v4 = vld [vmem:[#allocation4 + $0x218] sm:$0xff] (%p60_p0)  ;;  %v753_v5 = vld [vmem:[#allocation4 + $0x240] sm:$0xff] (%p60_p0)  ;;  %s883_s0 = smov (%p60_p0), [#allocation9]  }
  0x1b   :  { %v758_v58 = vld [vmem:[#allocation4 + $0x268] sm:$0xff] (%p60_p0)  ;;  %v747_v9 = vld [vmem:[#allocation4 + $0x210] sm:$0xff] (%p60_p0)  ;;  %v745_v11 = vld [vmem:[#allocation4 + $0x200] sm:$0xff] (%p60_p0)  ;;  %s532_s4 = sshll.u32 (%p60_p0), %s883_s0, 4  ;;  %s533_s4 = int_to_ptr.vmem [resolvable:$true] %s532_s4 }
  0x1c   :  { %v750_v62 = vld [vmem:[#allocation4 + $0x228] sm:$0xff] (%p60_p0) }
  0x1d   : > { %282 = vmatpush.bf16.msra.mxu2 %v737_v10  ;;  %v722_v21 = vld [vmem:[#allocation3 + $0x4] sm:$0xf]  ;;  %v754_v3 = vld [vmem:[#allocation4 + $0x248] sm:$0xff] (%p60_p0) }
  0x1e   : > { %268 = vmatpush.bf16.msra.mxu1 %v729_v17  ;;  %v571_v22 = vld [vmem:[#allocation3 + $0x8] sm:$0xf0]  ;;  %v746_v10 = vld [vmem:[#allocation4 + $0x208] sm:$0xff] (%p60_p0) }
  0x1f   : > { %v574_v23 = vor.u32 %v722_v21, %v571_v22 }
  0x20   :  { %787 = vset.pattern.permute.xlu0 (%p60_p0), %v882_v53 }
  0x21   : > { %283 = vmatpush.bf16.msra.mxu2 %v736_v12  ;;  %336 = vperm.xlu0 (%p60_p0), %787, %v332_v51  }
  0x22   : > { %269 = vmatpush.bf16.msra.mxu1 %v728_v19 }
  0x25   : > { %284 = vmatpush.bf16.msra.mxu2 %v735_v14 }
  0x26   : > { %270 = vmatpush.bf16.msra.mxu1 %v727_v24 }
  0x29   : > { %285 = vmatpush.bf16.msra.mxu2 %v734_v18  ;;  %341 = vperm.xlu0 (%p60_p0), %787, %v333_v57  }
  0x2a   : > { %271 = vmatpush.bf16.msra.mxu1 %v726_v25 }
  0x2d   : > { %286 = vmatpush.bf16.msra.mxu2 %v733_v20 }
  0x2e   : > { %272 = vmatpush.bf16.msra.mxu1 %v725_v26 }
  0x30   : > { %287 = vmatmul.bf16.vlgmr.msra.gmra.mxu2 %v574_v23  ;;  %v788_v23 = vld [vmem:[#allocation7 + $0x4] ss:$0 sm:$0xff] (%p60_p0) }
  0x31   :  { %512 = vmatpush.bf16.msra.mxu2 (%p60_p0), %v760_v54 }
  0x35   :  { %513 = vmatpush.bf16.msra.mxu2 (%p60_p0), %v759_v56 }
  0x39   :  { %514 = vmatpush.bf16.msra.mxu2 (%p60_p0), %v758_v58 }
  0x3d   :  { %515 = vmatpush.bf16.msra.mxu2 (%p60_p0), %v757_v59 }
  0x41   :  { %516 = vmatpush.bf16.msra.mxu2 (%p60_p0), %v756_v61 }
  0x45   :  { %517 = vmatpush.bf16.msra.mxu2 (%p60_p0), %v755_v63 }
  0x49   :  { %518 = vmatpush.bf16.msra.mxu2 (%p60_p0), %v754_v3 }
  0x4d   :  { %519 = vmatpush.bf16.msra.mxu2 (%p60_p0), %v753_v5 }
  0x82   : > { %v102_v27 = vpop.permute.xlu0 %101 }
  0x8a   : > { %v107_v31 = vpop.permute.xlu0 %106 }
  0x93   :  { %v337_v12 = vpop.permute.xlu0 (%p60_p0), %336 }
  0x95   : > { %v92_v28 = vpop.f32.mrf.mxu0 }
  0x96   : > { %v109_v29 = vmul.f32 %v102_v27, %v92_v28 }
  0x98   : > { %v111_v30 = vpack.c.bf16 %v109_v29, %v109_v29 }
  0x9a   : > { %113 = vst [vmem:[#allocation3] sm:$0xf] %v111_v30 }
  0x9b   :  { %v342_v16 = vpop.permute.xlu0 (%p60_p0), %341 }
  0x9d   : > { %v94_v32 = vpop.f32.mrf.mxu0 }
  0x9e   : > { %v110_v33 = vmul.f32 %v107_v31, %v94_v32 }
  0xa0   : > { %v112_v34 = vpack.c.bf16 %v110_v33, %v110_v33 }
  0xa1   : > { %v569_v35 = vld [vmem:[#allocation3] sm:$0xf] }
  0xa2   : > { %114 = vst [vmem:[#allocation3 + $0x8] sm:$0xf] %v112_v34 }
  0xa9   : > { %v723_v36 = vld [vmem:[#allocation3 + $0x4] sm:$0xf0] }
  0xaa   : > { %v570_v37 = vor.u32 %v723_v36, %v569_v35 }
  0xac   : > { %273 = vmatmul.bf16.vlgmr.msra.gmra.mxu1 %v570_v37 }
  0xad   :  { %498 = vmatpush.bf16.msra.mxu1 (%p60_p0), %v752_v55 }
  0xb1   :  { %499 = vmatpush.bf16.msra.mxu1 (%p60_p0), %v751_v60 }
  0xb3   : > { %v288_v38 = vpop.f32.mrf.mxu2 }
  0xb5   :  { %500 = vmatpush.bf16.msra.mxu1 (%p60_p0), %v750_v62 }
  0xb9   :  { %501 = vmatpush.bf16.msra.mxu1 (%p60_p0), %v749_v2 }
  0xbb   : > { %v290_v45 = vpop.f32.mrf.mxu2 }
  0xbd   :  { %502 = vmatpush.bf16.msra.mxu1 (%p60_p0), %v748_v4 }
  0xc1   :  { %503 = vmatpush.bf16.msra.mxu1 (%p60_p0), %v747_v9 }
  0xc5   :  { %504 = vmatpush.bf16.msra.mxu1 (%p60_p0), %v746_v10 }
  0xc9   :  { %505 = vmatpush.bf16.msra.mxu1 (%p60_p0), %v745_v11 }
 0x129   : > { %v274_v39 = vpop.f32.mrf.mxu1 }
 0x12a   : > { %v275_v41 = vadd.f32 %v786_v40, %v274_v39 }
 0x12c   : > { %v289_v43 = vadd.f32 %v288_v38, %v275_v41 }
 0x12e   : > { %v293_v47 = vmax.f32 %v289_v43, 0.0 }
 0x131   : > { %v276_v42 = vpop.f32.mrf.mxu1 }
 0x132   : > { %v277_v44 = vadd.f32 %v786_v40, %v276_v42 }
 0x134   : > { %v291_v46 = vadd.f32 %v290_v45, %v277_v44 }
 0x136   : > { %v294_v48 = vmax.f32 %v291_v46, 0.0  ;;  %62 = sbr.rel (!%p60_p0) target bundleno = 14 (0xe), region = 59 }
 0x138   : > { %v764_v49 = vpack.c.bf16 %v294_v48, %v293_v47 }
 0x13a   : > { %765 = vst [vmem:[#allocation2] sm:$0xff] %v764_v49  }
 0x141   :  { %v741_v50 = vld [vmem:[#allocation2] sm:$0xff] }
 0x142   :  { %325 = vmatpush.bf16.msra.mxu0 %v741_v50  ;;  %v299_v0 = vld [vmem:[#allocation2] sm:$0xf]  ;;  %v300_v1 = vld [vmem:[#allocation2 + $0x4] sm:$0xf] }
 0x143   :  { %350 = vst [vmem:[#allocation3 + $0x4] sm:$0xf] %v299_v0 }
 0x144   :  { %351 = vst [vmem:[#allocation3 + $0xc] sm:$0xf] %v300_v1 }
 0x145   :  { %647 = vmatmul.msk.bf16.vlgmr.msra.gmra.mxu0 %vm79_vm0, %v742_v52 }
 0x14a   :  { %v743_v6 = vld [vmem:[#allocation3 + $0x4] sm:$0xf] }
 0x14b   :  { %v652_v7 = vld [vmem:[#allocation3 + $0x8] sm:$0xf0] }
 0x14c   :  { %v655_v8 = vor.u32 %v743_v6, %v652_v7 }
 0x14e   :  { %520 = vmatmul.bf16.vlgmr.msra.gmra.mxu2 %v655_v8 }
 0x1c2   :  { %v327_v13 = vpop.f32.mrf.mxu0 }
 0x1c3   :  { %v344_v14 = vmul.f32 %v337_v12, %v327_v13 }
 0x1c5   :  { %v346_v15 = vpack.c.bf16 %v344_v14, %v344_v14 }
 0x1c7   :  { %348 = vst [vmem:[#allocation3] sm:$0xf] %v346_v15 }
 0x1ca   :  { %v329_v17 = vpop.f32.mrf.mxu0 }
 0x1cb   :  { %v345_v18 = vmul.f32 %v342_v16, %v329_v17 }
 0x1cd   :  { %v347_v19 = vpack.c.bf16 %v345_v18, %v345_v18 }
 0x1ce   :  { %v650_v20 = vld [vmem:[#allocation3] sm:$0xf] }
 0x1cf   :  { %349 = vst [vmem:[#allocation3 + $0x8] sm:$0xf] %v347_v19 }
 0x1d1   :  { %v521_v24 = vpop.f32.mrf.mxu2 }
 0x1d6   :  { %v744_v21 = vld [vmem:[#allocation3 + $0x4] sm:$0xf0] }
 0x1d7   :  { %v651_v22 = vor.u32 %v744_v21, %v650_v20 }
 0x1d9   :  { %506 = vmatmul.bf16.vlgmr.msra.gmra.mxu1 %v651_v22  ;;  %v523_v30 = vpop.f32.mrf.mxu2 }
 0x256   :  { %v507_v25 = vpop.f32.mrf.mxu1 }
 0x257   :  { %v508_v26 = vadd.f32 %v788_v23, %v507_v25 }
 0x259   :  { %v522_v27 = vadd.f32 %v521_v24, %v508_v26 }
 0x25b   :  { %526 = vst [vmem:[#allocation9] sm:$0xff] %v522_v27 }
 0x25e   :  { %v509_v28 = vpop.f32.mrf.mxu1 }
 0x25f   :  { %v510_v29 = vadd.f32 %v788_v23, %v509_v28 }
 0x261   :  { %v524_v31 = vadd.f32 %v523_v30, %v510_v29 }
 0x263   :  { %527 = vst [vmem:[#allocation9 + $0x8] sm:$0xff] %v524_v31 }
 0x264   :  { %540 = dma.vmem_to_hbm [thread:$0]  %s533_s4, 256, %s535_s24, [#allocation6], %s884_s25, %s884_s25, %s885_s26  }
 0x265   :  { %869 = dma.done.wait [#allocation6], 256  }
 0x266   :  { %870 = vsyncadd [#allocation6], 4294967040 }
 0x267   :  { %545 = vsyncpa [#allocation5], 1 }
 0x268   :  { %546 = vsyncpa [#allocation8], 1 }
 0x269   :  { %547 = vsyncpa [#allocation6], 1 }

</bundles_post_ra>
